<compile_context>
chip_gen: v7x
topology: tpu7x:2x2x1
jax: 0.10.0
libtpu: 0.0.40
codegen_flags: <defaults>
</compile_context>

<pallas_src>
import jax
import jax.numpy as jnp
from jax.experimental import pallas as pl
from jax.experimental.pallas import tpu as pltpu

IN_DIM = 28 * 28        # 784 (unpadded K; Mosaic lane-pads in VMEM for free)
H1 = 256
H2 = 128
OUT_DIM = 10
OUT_PAD = 128           # lane-dense padded output width
B_TILE_MAX = 1024       # batch tile cap (multiple of 128)


def _round_up(x, m):
    return (x + m - 1) // m * m


def _mlp_kernel(x_ref, w1_ref, b1_ref, w2_ref, b2_ref, w3_ref, b3_ref, o_ref):
    """One batch-tile of the full MLP forward pass (fc1+relu, fc2+relu, fc3)."""
    # x arrives as f32 straight from HBM; cast to bf16 in-kernel (VPU op hidden
    # under the fc1 MXU passes) instead of a separate XLA pad/cast HBM pass.
    x = x_ref[...].astype(jnp.bfloat16)                          # [bt, 784]
    # fc1 + ReLU  (dropout1 is identity in eval mode)
    h1 = jnp.dot(x, w1_ref[...], preferred_element_type=jnp.float32)
    h1 = jnp.maximum(h1 + b1_ref[...], 0.0)                      # f32 [bt, 256]
    # fc2 + ReLU  (dropout2 is identity in eval mode)
    h2 = jnp.dot(h1.astype(jnp.bfloat16), w2_ref[...],
                 preferred_element_type=jnp.float32)
    h2 = jnp.maximum(h2 + b2_ref[...], 0.0)                      # f32 [bt, 128]
    # fc3 (logits, padded to 128 lanes; extra columns are zero weights/bias)
    logits = jnp.dot(h2.astype(jnp.bfloat16), w3_ref[...],
                     preferred_element_type=jnp.float32)
    o_ref[...] = (logits + b3_ref[...]).astype(o_ref.dtype)      # bf16 [bt, 128]


@jax.jit
def enhanced_nn_forward(x, w1, b1, w2, b2, w3, b3):
    """Forward pass of EnhancedNN.

    Args:
      x:  [B, 1, 28, 28] float32 (NCHW, as in the PyTorch module)
      w1: [784, 256], b1: [256]
      w2: [256, 128], b2: [128]
      w3: [128, 10],  b3: [10]
    Returns:
      logits [B, 10] float32
    """
    B = x.shape[0]

    # Tile selection (shapes are static at trace time):
    #  * tiny batches: multiple of 16 rows (full bf16 vregs, unmasked stores)
    #  * larger batches: multiple of 128, at least 2 grid steps so the
    #    "parallel" batch axis can shard across v7x's two TensorCores,
    #    capped at B_TILE_MAX.  Batch is zero-padded, never asserted.
    if B > 128:
        b_tile = min(B_TILE_MAX, _round_up((B + 1) // 2, 128))
    else:
        b_tile = max(16, _round_up(B, 16))
    b_pad = _round_up(B, b_tile)

    # ---- operand preparation (cheap XLA ops) ----
    x_flat = x.reshape(B, IN_DIM).astype(jnp.float32)     # x.view(-1, 784); f32
    if b_pad != B:
        x_flat = jnp.pad(x_flat, ((0, b_pad - B), (0, 0)))

    # Weights/biases are VMEM-resident (constant block index) -> one-time DMA;
    # cast to bf16 once here rather than per grid step inside the kernel.
    w1b = w1.astype(jnp.bfloat16)
    w2b = w2.astype(jnp.bfloat16)
    w3p = jnp.pad(w3, ((0, 0), (0, OUT_PAD - OUT_DIM))).astype(jnp.bfloat16)

    b1r = b1.reshape(1, H1).astype(jnp.float32)
    b2r = b2.reshape(1, H2).astype(jnp.float32)
    b3r = jnp.pad(b3.reshape(1, OUT_DIM),
                  ((0, 0), (0, OUT_PAD - OUT_DIM))).astype(jnp.float32)

    grid = (b_pad // b_tile,)

    # Constant-index blocks stay resident in VMEM across grid steps.
    full = lambda shape: pl.BlockSpec(shape, lambda i: (0, 0))

    out = pl.pallas_call(
        _mlp_kernel,
        out_shape=jax.ShapeDtypeStruct((b_pad, OUT_PAD), jnp.bfloat16),
        grid_spec=pltpu.PrefetchScalarGridSpec(
            num_scalar_prefetch=0,
            grid=grid,
            in_specs=[
                pl.BlockSpec((b_tile, IN_DIM), lambda i: (i, 0)),  # x tile (f32)
                full((IN_DIM, H1)),     # w1 (bf16)
                full((1, H1)),          # b1 (f32)
                full((H1, H2)),         # w2 (bf16)
                full((1, H2)),          # b2 (f32)
                full((H2, OUT_PAD)),    # w3 (bf16, lane-padded)
                full((1, OUT_PAD)),     # b3 (f32, lane-padded)
            ],
            out_specs=pl.BlockSpec((b_tile, OUT_PAD), lambda i: (i, 0)),
        ),
        compiler_params=pltpu.CompilerParams(
            dimension_semantics=("parallel",),
            vmem_limit_bytes=32 * 1024 * 1024,
        ),
    )(x_flat, w1b, b1r, w2b, b2r, w3p, b3r)

    return out[:B, :OUT_DIM].astype(jnp.float32)


def init_params(key):
    """Deterministic init mimicking torch.nn.Linear default (U[-1/sqrt(fan_in), +])."""
    k1, k2, k3, k4, k5, k6 = jax.random.split(key, 6)

    def linear(kw, kb, fan_in, fan_out):
        bound = 1.0 / jnp.sqrt(fan_in)
        w = jax.random.uniform(kw, (fan_in, fan_out), jnp.float32, -bound, bound)
        b = jax.random.uniform(kb, (fan_out,), jnp.float32, -bound, bound)
        return w, b

    w1, b1 = linear(k1, k2, IN_DIM, H1)
    w2, b2 = linear(k3, k4, H1, H2)
    w3, b3 = linear(k5, k6, H2, OUT_DIM)
    return w1, b1, w2, b2, w3, b3


if __name__ == "__main__":
    key = jax.random.PRNGKey(0)
    kx, kp = jax.random.split(key)

    B = 8  # small batch (not a multiple of the tile -> exercises batch padding)
    x = jax.random.normal(kx, (B, 1, 28, 28), jnp.float32)
    params = init_params(kp)

    logits = enhanced_nn_forward(x, *params)
    logits = jax.block_until_ready(logits)

    # Reference check in plain JAX f32 (eval-mode dropout == identity).
    w1, b1, w2, b2, w3, b3 = params
    xf = x.reshape(B, IN_DIM)
    h = jnp.maximum(xf @ w1 + b1, 0.0)
    h = jnp.maximum(h @ w2 + b2, 0.0)
    ref = h @ w3 + b3

    assert logits.shape == (B, OUT_DIM)
    # bf16 matmul operands / bf16 output with f32 accumulation -> loosened tol.
    assert jnp.allclose(logits, ref, atol=5e-2, rtol=5e-2), (
        f"max abs err = {jnp.max(jnp.abs(logits - ref))}")

    print("KERNEL_OK")
</pallas_src>

<mosaic_0001>
module attributes {stable_mosaic.version = 11 : i64} {
  func.func @_mlp_kernel(%arg0: i32, %arg1: memref<16x784xf32, #tpu.memory_space<vmem>>, %arg2: memref<784x256xbf16, #tpu.memory_space<vmem>>, %arg3: memref<1x256xf32, #tpu.memory_space<vmem>>, %arg4: memref<256x128xbf16, #tpu.memory_space<vmem>>, %arg5: memref<1x128xf32, #tpu.memory_space<vmem>>, %arg6: memref<128x128xbf16, #tpu.memory_space<vmem>>, %arg7: memref<1x128xf32, #tpu.memory_space<vmem>>, %arg8: memref<16x128xbf16, #tpu.memory_space<vmem>>) attributes {dimension_semantics = [#tpu.dimension_semantics<parallel>], iteration_bounds = array<i64: 1>, scalar_prefetch = 0 : i64, scratch_operands = 0 : i64, tpu.core_type = #tpu.core_type<tc>, window_params = [{transform_indices = @transform_0, window_bounds = array<i64: 16, 784>}, {pipeline_mode = #tpu.pipeline_mode<synchronous>, transform_indices = @transform_1, window_bounds = array<i64: 784, 256>}, {pipeline_mode = #tpu.pipeline_mode<synchronous>, transform_indices = @transform_2, window_bounds = array<i64: 1, 256>}, {pipeline_mode = #tpu.pipeline_mode<synchronous>, transform_indices = @transform_3, window_bounds = array<i64: 256, 128>}, {pipeline_mode = #tpu.pipeline_mode<synchronous>, transform_indices = @transform_4, window_bounds = array<i64: 1, 128>}, {pipeline_mode = #tpu.pipeline_mode<synchronous>, transform_indices = @transform_5, window_bounds = array<i64: 128, 128>}, {pipeline_mode = #tpu.pipeline_mode<synchronous>, transform_indices = @transform_6, window_bounds = array<i64: 1, 128>}, {transform_indices = @transform_7, window_bounds = array<i64: 16, 128>}]} {
    %c0 = arith.constant 0 : index
    %c0_0 = arith.constant 0 : index
    %0 = vector.load %arg1[%c0, %c0_0] : memref<16x784xf32, #tpu.memory_space<vmem>>, vector<16x784xf32>
    %1 = arith.truncf %0 : vector<16x784xf32> to vector<16x784xbf16>
    %c0_1 = arith.constant 0 : index
    %c0_2 = arith.constant 0 : index
    %2 = vector.load %arg2[%c0_1, %c0_2] : memref<784x256xbf16, #tpu.memory_space<vmem>>, vector<784x256xbf16>
    %cst = arith.constant dense<0.000000e+00> : vector<16x256xf32>
    %3 = tpu.matmul %1, %2, %cst {dimension_numbers = #tpu.dot_dimension_numbers<[1], [0], [0], [1], [0, 0, 1, 1], [], []>} : vector<16x784xbf16>, vector<784x256xbf16>, vector<16x256xf32> -> vector<16x256xf32>
    %c0_3 = arith.constant 0 : index
    %c0_4 = arith.constant 0 : index
    %4 = vector.load %arg3[%c0_3, %c0_4] : memref<1x256xf32, #tpu.memory_space<vmem>>, vector<1x256xf32>
    %5 = vector.broadcast %4 : vector<1x256xf32> to vector<16x256xf32>
    %6 = arith.addf %3, %5 : vector<16x256xf32>
    %cst_5 = arith.constant 0.000000e+00 : f32
    %7 = vector.broadcast %cst_5 : f32 to vector<16x256xf32>
    %8 = arith.maximumf %6, %7 : vector<16x256xf32>
    %9 = arith.truncf %8 : vector<16x256xf32> to vector<16x256xbf16>
    %c0_6 = arith.constant 0 : index
    %c0_7 = arith.constant 0 : index
    %10 = vector.load %arg4[%c0_6, %c0_7] : memref<256x128xbf16, #tpu.memory_space<vmem>>, vector<256x128xbf16>
    %cst_8 = arith.constant dense<0.000000e+00> : vector<16x128xf32>
    %11 = tpu.matmul %9, %10, %cst_8 {dimension_numbers = #tpu.dot_dimension_numbers<[1], [0], [0], [1], [0, 0, 1, 1], [], []>} : vector<16x256xbf16>, vector<256x128xbf16>, vector<16x128xf32> -> vector<16x128xf32>
    %c0_9 = arith.constant 0 : index
    %c0_10 = arith.constant 0 : index
    %12 = vector.load %arg5[%c0_9, %c0_10] : memref<1x128xf32, #tpu.memory_space<vmem>>, vector<1x128xf32>
    %13 = vector.broadcast %12 : vector<1x128xf32> to vector<16x128xf32>
    %14 = arith.addf %11, %13 : vector<16x128xf32>
    %cst_11 = arith.constant 0.000000e+00 : f32
    %15 = vector.broadcast %cst_11 : f32 to vector<16x128xf32>
    %16 = arith.maximumf %14, %15 : vector<16x128xf32>
    %17 = arith.truncf %16 : vector<16x128xf32> to vector<16x128xbf16>
    %c0_12 = arith.constant 0 : index
    %c0_13 = arith.constant 0 : index
    %18 = vector.load %arg6[%c0_12, %c0_13] : memref<128x128xbf16, #tpu.memory_space<vmem>>, vector<128x128xbf16>
    %cst_14 = arith.constant dense<0.000000e+00> : vector<16x128xf32>
    %19 = tpu.matmul %17, %18, %cst_14 {dimension_numbers = #tpu.dot_dimension_numbers<[1], [0], [0], [1], [0, 0, 1, 1], [], []>} : vector<16x128xbf16>, vector<128x128xbf16>, vector<16x128xf32> -> vector<16x128xf32>
    %c0_15 = arith.constant 0 : index
    %c0_16 = arith.constant 0 : index
    %20 = vector.load %arg7[%c0_15, %c0_16] : memref<1x128xf32, #tpu.memory_space<vmem>>, vector<1x128xf32>
    %21 = vector.broadcast %20 : vector<1x128xf32> to vector<16x128xf32>
    %22 = arith.addf %19, %21 : vector<16x128xf32>
    %23 = arith.truncf %22 : vector<16x128xf32> to vector<16x128xbf16>
    %c0_17 = arith.constant 0 : index
    %c0_18 = arith.constant 0 : index
    %24 = vector.load %arg8[%c0_17, %c0_18] : memref<16x128xbf16, #tpu.memory_space<vmem>>, vector<16x128xbf16>
    tpu.vector_store %arg8[%c0_17, %c0_18], %23 {strides = array<i32>} : memref<16x128xbf16, #tpu.memory_space<vmem>>, vector<16x128xbf16>,
    return
  }
  func.func @transform_0(%arg0: i32) -> (i32, i32) {
    %c0_i32 = arith.constant 0 : i32
    %c0_i32_0 = arith.constant 0 : i32
    return %arg0, %c0_i32 : i32, i32
  }
  func.func @transform_1(%arg0: i32) -> (i32, i32) {
    %c0_i32 = arith.constant 0 : i32
    %c0_i32_0 = arith.constant 0 : i32
    %c0_i32_1 = arith.constant 0 : i32
    return %c0_i32, %c0_i32_0 : i32, i32
  }
  func.func @transform_2(%arg0: i32) -> (i32, i32) {
    %c0_i32 = arith.constant 0 : i32
    %c0_i32_0 = arith.constant 0 : i32
    %c0_i32_1 = arith.constant 0 : i32
    return %c0_i32, %c0_i32_0 : i32, i32
  }
  func.func @transform_3(%arg0: i32) -> (i32, i32) {
    %c0_i32 = arith.constant 0 : i32
    %c0_i32_0 = arith.constant 0 : i32
    %c0_i32_1 = arith.constant 0 : i32
    return %c0_i32, %c0_i32_0 : i32, i32
  }
  func.func @transform_4(%arg0: i32) -> (i32, i32) {
    %c0_i32 = arith.constant 0 : i32
    %c0_i32_0 = arith.constant 0 : i32
    %c0_i32_1 = arith.constant 0 : i32
    return %c0_i32, %c0_i32_0 : i32, i32
  }
  func.func @transform_5(%arg0: i32) -> (i32, i32) {
    %c0_i32 = arith.constant 0 : i32
    %c0_i32_0 = arith.constant 0 : i32
    %c0_i32_1 = arith.constant 0 : i32
    return %c0_i32, %c0_i32_0 : i32, i32
  }
  func.func @transform_6(%arg0: i32) -> (i32, i32) {
    %c0_i32 = arith.constant 0 : i32
    %c0_i32_0 = arith.constant 0 : i32
    %c0_i32_1 = arith.constant 0 : i32
    return %c0_i32, %c0_i32_0 : i32, i32
  }
  func.func @transform_7(%arg0: i32) -> (i32, i32) {
    %c0_i32 = arith.constant 0 : i32
    %c0_i32_0 = arith.constant 0 : i32
    return %arg0, %c0_i32 : i32, i32
  }
}

</mosaic_0001>

<bundles_post_ra>
// kernel: enhanced_nn_forward.1
= control target key start
LH: loop header
LB: loop body
LE: loop exit
PB: predicated region body
PF: predicated region fallthrough
CT: control target
= control target key end

     0   :  { %vm648_vm0 = vcmask 130048   ;;  %vm1512_vm1 = vmmov 0   ;;  %s1973_s1 = inlined_call_operand.vmem [shape: bf16[784,256], index: 1, kind: input, shape index: {}]   ;;  %s1974_s0 = inlined_call_operand.vmem [shape: f32[16,784], index: 0, kind: input, shape index: {}]   ;;  %s1975_s3 = inlined_call_operand.vmem [shape: bf16[256,128], index: 3, kind: input, shape index: {}]   ;;  %s1976_s5 = inlined_call_operand.vmem [shape: bf16[128,128], index: 5, kind: input, shape index: {}]   ;;  %s1977_s2 = inlined_call_operand.vmem [shape: f32[1,256], index: 2, kind: input, shape index: {}]   ;;  %s1978_s4 = inlined_call_operand.vmem [shape: f32[1,128], index: 4, kind: input, shape index: {}]   ;;  %s1979_s6 = inlined_call_operand.vmem [shape: f32[1,128], index: 6, kind: input, shape index: {}]   ;;  %s1980_s7 = inlined_call_operand.vmem [shape: bf16[16,128], index: 7, kind: output, shape index: {}]  }
   0x1   :  { %v1339_v0 = vld [vmem:[%s1973_s1 + $0x104] ss:$8 sps:$4 sm:$0xff]   ;;  %v1341_v1 = vld [vmem:[%s1973_s1 + $0x100] ss:$8 sps:$4 sm:$0xff]   ;;  %v1342_v2 = vld [vmem:[%s1973_s1 + $0x114] ss:$8 sps:$4 sm:$0xff]  }
   0x2   :  { %695 = vmatprep.subr.bf16.mxu0 %v1339_v0  ;;  %v1344_v3 = vld [vmem:[%s1973_s1 + $0x110] ss:$8 sps:$4 sm:$0xff]   ;;  %v1345_v4 = vld [vmem:[%s1973_s1 + $0x124] ss:$8 sps:$4 sm:$0xff]   ;;  %v1347_v5 = vld [vmem:[%s1973_s1 + $0x120] ss:$8 sps:$4 sm:$0xff]  }
   0x3   :  { %696 = vmatpush1.bf16.msra.mxu0 %v1341_v1  ;;  %v1348_v6 = vld [vmem:[%s1973_s1 + $0x134] ss:$8 sps:$4 sm:$0xff]   ;;  %v1350_v7 = vld [vmem:[%s1973_s1 + $0x130] ss:$8 sps:$4 sm:$0xff]   ;;  %v1351_v8 = vld [vmem:[%s1973_s1 + $0x144] ss:$8 sps:$4 sm:$0xff]  }
   0x4   :  { %697 = vmatprep.subr.bf16.mxu0 %v1342_v2  ;;  %v1353_v9 = vld [vmem:[%s1973_s1 + $0x140] ss:$8 sps:$4 sm:$0xff]   ;;  %v1354_v10 = vld [vmem:[%s1973_s1 + $0x154] ss:$8 sps:$4 sm:$0xff]   ;;  %v1356_v11 = vld [vmem:[%s1973_s1 + $0x150] ss:$8 sps:$4 sm:$0xff]  }
   0x5   :  { %v1357_v12 = vld [vmem:[%s1973_s1 + $0x164] ss:$8 sps:$4 sm:$0xff]   ;;  %v30_v13 = vld [vmem:[%s1974_s0 + $0x18] sm:$0xff]  ;;  %v37_v14 = vld [vmem:[%s1974_s0 + $0x50] sm:$0xff] }
   0x6   :  { %v44_v15 = vpack.c.bf16 %v37_v14, %v30_v13  ;;  %v1359_v16 = vld [vmem:[%s1973_s1 + $0x160] ss:$8 sps:$4 sm:$0xff]   ;;  %v1360_v17 = vld [vmem:[%s1973_s1 + $0x174] ss:$8 sps:$4 sm:$0xff]   ;;  %v1393_v18 = vld [vmem:[%s1973_s1 + $0x4] ss:$8 sps:$4 sm:$0xff]  }
   0x7   :  { %698 = vmatpush1.bf16.msra.mxu0 %v1344_v3  ;;  %v1362_v19 = vld [vmem:[%s1973_s1 + $0x170] ss:$8 sps:$4 sm:$0xff]   ;;  %v1363_v20 = vld [vmem:[%s1973_s1 + $0x184] ss:$8 sps:$4 sm:$0xff]   ;;  %v1398_v21 = vld [vmem:[%s1973_s1] ss:$8 sps:$4 sm:$0xff]   ;;  %652 = vmatprep.subr.bf16.mxu1 %v1393_v18 }
   0x8   :  { %699 = vmatprep.subr.bf16.mxu0 %v1345_v4  ;;  %727 = vmatprep.mubr.bf16.mxu0 %v44_v15  ;;  %v1399_v22 = vld [vmem:[%s1973_s1 + $0x14] ss:$8 sps:$4 sm:$0xff]   ;;  %v1365_v23 = vld [vmem:[%s1973_s1 + $0x180] ss:$8 sps:$4 sm:$0xff]   ;;  %v1404_v24 = vld [vmem:[%s1973_s1 + $0x10] ss:$8 sps:$4 sm:$0xff]  }
   0x9   :  { %653 = vmatpush1.bf16.msra.mxu1 %v1398_v21  ;;  %v1405_v25 = vld [vmem:[%s1973_s1 + $0x24] ss:$8 sps:$4 sm:$0xff]   ;;  %v1366_v26 = vld [vmem:[%s1973_s1 + $0x194] ss:$8 sps:$4 sm:$0xff]   ;;  %v1410_v27 = vld [vmem:[%s1973_s1 + $0x20] ss:$8 sps:$4 sm:$0xff]  }
   0xa   :  { %654 = vmatprep.subr.bf16.mxu1 %v1399_v22  ;;  %v1411_v28 = vld [vmem:[%s1973_s1 + $0x34] ss:$8 sps:$4 sm:$0xff]   ;;  %v1368_v29 = vld [vmem:[%s1973_s1 + $0x190] ss:$8 sps:$4 sm:$0xff]   ;;  %v1369_v30 = vld [vmem:[%s1973_s1 + $0x1a4] ss:$8 sps:$4 sm:$0xff]  }
   0xb   :  { %700 = vmatpush1.bf16.msra.mxu0 %v1347_v5  ;;  %v1416_v31 = vld [vmem:[%s1973_s1 + $0x30] ss:$8 sps:$4 sm:$0xff]   ;;  %v1417_v32 = vld [vmem:[%s1973_s1 + $0x44] ss:$8 sps:$4 sm:$0xff]   ;;  %v1371_v33 = vld [vmem:[%s1973_s1 + $0x1a0] ss:$8 sps:$4 sm:$0xff]  }
   0xc   :  { %701 = vmatprep.subr.bf16.mxu0 %v1348_v6  ;;  %v1372_v34 = vld [vmem:[%s1973_s1 + $0x1b4] ss:$8 sps:$4 sm:$0xff]   ;;  %v1422_v35 = vld [vmem:[%s1973_s1 + $0x40] ss:$8 sps:$4 sm:$0xff]   ;;  %v1374_v37 = vld [vmem:[%s1973_s1 + $0x1b0] ss:$8 sps:$4 sm:$0xff]  }
   0xd   :  { %655 = vmatpush1.bf16.msra.mxu1 %v1404_v24  ;;  %v1423_v36 = vld [vmem:[%s1973_s1 + $0x54] ss:$8 sps:$4 sm:$0xff]   ;;  %v1375_v38 = vld [vmem:[%s1973_s1 + $0x1c4] ss:$8 sps:$4 sm:$0xff]   ;;  %v1428_v39 = vld [vmem:[%s1973_s1 + $0x50] ss:$8 sps:$4 sm:$0xff]  }
   0xe   :  { %656 = vmatprep.subr.bf16.mxu1 %v1405_v25  ;;  %v1429_v40 = vld [vmem:[%s1973_s1 + $0x64] ss:$8 sps:$4 sm:$0xff]   ;;  %v1377_v41 = vld [vmem:[%s1973_s1 + $0x1c0] ss:$8 sps:$4 sm:$0xff]   ;;  %v1378_v42 = vld [vmem:[%s1973_s1 + $0x1d4] ss:$8 sps:$4 sm:$0xff]  }
   0xf   :  { %702 = vmatpush1.bf16.msra.mxu0 %v1350_v7  ;;  %v1434_v43 = vld [vmem:[%s1973_s1 + $0x60] ss:$8 sps:$4 sm:$0xff]   ;;  %v1435_v44 = vld [vmem:[%s1973_s1 + $0x74] ss:$8 sps:$4 sm:$0xff]   ;;  %v1380_v45 = vld [vmem:[%s1973_s1 + $0x1d0] ss:$8 sps:$4 sm:$0xff]  }
  0x10   :  { %703 = vmatprep.subr.bf16.mxu0 %v1351_v8  ;;  %v1381_v46 = vld [vmem:[%s1973_s1 + $0x1e4] ss:$8 sps:$4 sm:$0xff]   ;;  %v1440_v47 = vld [vmem:[%s1973_s1 + $0x70] ss:$8 sps:$4 sm:$0xff]   ;;  %v1383_v49 = vld [vmem:[%s1973_s1 + $0x1e0] ss:$8 sps:$4 sm:$0xff]  }
  0x11   :  { %657 = vmatpush1.bf16.msra.mxu1 %v1410_v27  ;;  %v1441_v48 = vld [vmem:[%s1973_s1 + $0x84] ss:$8 sps:$4 sm:$0xff]   ;;  %v1384_v50 = vld [vmem:[%s1973_s1 + $0x1f4] ss:$8 sps:$4 sm:$0xff]   ;;  %v1446_v51 = vld [vmem:[%s1973_s1 + $0x80] ss:$8 sps:$4 sm:$0xff]  }
  0x12   :  { %658 = vmatprep.subr.bf16.mxu1 %v1411_v28  ;;  %v1447_v52 = vld [vmem:[%s1973_s1 + $0x94] ss:$8 sps:$4 sm:$0xff]   ;;  %v1386_v53 = vld [vmem:[%s1973_s1 + $0x1f0] ss:$8 sps:$4 sm:$0xff]   ;;  %v36_v55 = vld [vmem:[%s1974_s0 + $0x48] sm:$0xff] }
  0x13   :  { %704 = vmatpush1.bf16.msra.mxu0 %v1353_v9  ;;  %v29_v54 = vld [vmem:[%s1974_s0 + $0x10] sm:$0xff]  ;;  %v1389_v56 = vld [vmem:[%s1973_s1 + $0x204] ss:$8 sps:$4 sm:$0xff]   ;;  %v1387_v58 = vld [vmem:[%s1973_s1 + $0x200] ss:$8 sps:$4 sm:$0xff]  }
  0x14   :  { %705 = vmatprep.subr.bf16.mxu0 %v1354_v10  ;;  %v1452_v57 = vld [vmem:[%s1973_s1 + $0x90] ss:$8 sps:$4 sm:$0xff]   ;;  %v43_v59 = vpack.c.bf16 %v36_v55, %v29_v54  ;;  %v1453_v60 = vld [vmem:[%s1973_s1 + $0xa4] ss:$8 sps:$4 sm:$0xff]   ;;  %v1392_v63 = vld [vmem:[%s1973_s1 + $0x214] ss:$8 sps:$4 sm:$0xff]  }
  0x15   :  { %659 = vmatpush1.bf16.msra.mxu1 %v1416_v31  ;;  %v32_v61 = vld [vmem:[%s1974_s0 + $0x28] sm:$0xff]  ;;  %v39_v62 = vld [vmem:[%s1974_s0 + $0x60] sm:$0xff]  ;;  %v1459_v2 = vld [vmem:[%s1973_s1 + $0xb4] ss:$8 sps:$4 sm:$0xff]  }
  0x16   :  { %660 = vmatprep.subr.bf16.mxu1 %v1417_v32  ;;  %v46_v0 = vpack.c.bf16 %v39_v62, %v32_v61  ;;  %v1458_v1 = vld [vmem:[%s1973_s1 + $0xa0] ss:$8 sps:$4 sm:$0xff]   ;;  %v1390_v3 = vld [vmem:[%s1973_s1 + $0x210] ss:$8 sps:$4 sm:$0xff]   ;;  %v1397_v4 = vld [vmem:[%s1973_s1 + $0x224] ss:$8 sps:$4 sm:$0xff]  }
  0x17   :  { %706 = vmatpush1.bf16.msra.mxu0 %v1356_v11  ;;  %v28_v5 = vld [vmem:[%s1974_s0 + $0x8] sm:$0xff]  ;;  %v35_v6 = vld [vmem:[%s1974_s0 + $0x40] sm:$0xff]  ;;  %v1464_v7 = vld [vmem:[%s1973_s1 + $0xb0] ss:$8 sps:$4 sm:$0xff]   ;;  %v1510_v61 = vmov 0  }
  0x18   :  { %707 = vmatprep.subr.bf16.mxu0 %v1357_v12  ;;  %v42_v8 = vpack.c.bf16 %v35_v6, %v28_v5  ;;  %v1465_v9 = vld [vmem:[%s1973_s1 + $0xc4] ss:$8 sps:$4 sm:$0xff]   ;;  %v1395_v10 = vld [vmem:[%s1973_s1 + $0x220] ss:$8 sps:$4 sm:$0xff]   ;;  %v1403_v11 = vld [vmem:[%s1973_s1 + $0x234] ss:$8 sps:$4 sm:$0xff]  }
  0x19   :  { %661 = vmatpush1.bf16.msra.mxu1 %v1422_v35  ;;  %v1470_v12 = vld [vmem:[%s1973_s1 + $0xc0] ss:$8 sps:$4 sm:$0xff]   ;;  %v1471_v13 = vld [vmem:[%s1973_s1 + $0xd4] ss:$8 sps:$4 sm:$0xff]   ;;  %v1401_v14 = vld [vmem:[%s1973_s1 + $0x230] ss:$8 sps:$4 sm:$0xff]  }
  0x1a   :  { %662 = vmatprep.subr.bf16.mxu1 %v1423_v36  ;;  %684 = vmatprep.mubr.bf16.mxu1 %v42_v8  ;;  %v1409_v15 = vld [vmem:[%s1973_s1 + $0x244] ss:$8 sps:$4 sm:$0xff]   ;;  %v1415_v18 = vld [vmem:[%s1973_s1 + $0x254] ss:$8 sps:$4 sm:$0xff]   ;;  %v1413_v22 = vld [vmem:[%s1973_s1 + $0x250] ss:$8 sps:$4 sm:$0xff]  }
  0x1b   :  { %708 = vmatpush1.bf16.msra.mxu0 %v1359_v16  ;;  %v1407_v16 = vld [vmem:[%s1973_s1 + $0x240] ss:$8 sps:$4 sm:$0xff]   ;;  %v1483_v21 = vld [vmem:[%s1973_s1 + $0xf4] ss:$8 sps:$4 sm:$0xff]   ;;  %v1485_v24 = vld [vmem:[%s1973_s1 + $0xf0] ss:$8 sps:$4 sm:$0xff]  }
  0x1c   :  { %709 = vmatprep.subr.bf16.mxu0 %v1360_v17  ;;  %v1476_v17 = vld [vmem:[%s1973_s1 + $0xd0] ss:$8 sps:$4 sm:$0xff]   ;;  %v27_v25 = vld [vmem:[%s1974_s0] sm:$0xff]  ;;  %v1488_v32 = vld [vmem:[%s1975_s3 + $0x48] sm:$0xff]   ;;  %v1511_v8 = vmov 0.0  }
  0x1d   :  { %663 = vmatpush1.bf16.msra.mxu1 %v1428_v39  ;;  %v1486_v27 = vld [vmem:[%s1975_s3 + $0x40] sm:$0xff]   ;;  %v1489_v35 = vld [vmem:[%s1975_s3 + $0x8] sm:$0xff]   ;;  %v1490_v36 = vld [vmem:[%s1975_s3 + $0x50] sm:$0xff]  }
  0x1e   :  { %664 = vmatprep.subr.bf16.mxu1 %v1429_v40  ;;  %v1419_v28 = vld [vmem:[%s1973_s1 + $0x260] ss:$8 sps:$4 sm:$0xff]   ;;  %v1491_v39 = vld [vmem:[%s1975_s3 + $0x10] sm:$0xff]   ;;  %v1492_v40 = vld [vmem:[%s1975_s3 + $0x58] sm:$0xff]  }
  0x1f   :  { %710 = vmatpush1.bf16.msra.mxu0 %v1362_v19  ;;  %v1477_v19 = vld [vmem:[%s1973_s1 + $0xe4] ss:$8 sps:$4 sm:$0xff]   ;;  %v1475_v54 = vld [vmem:[%s1973_s1 + $0x2f4] ss:$8 sps:$4 sm:$0xff]   ;;  %v1473_v55 = vld [vmem:[%s1973_s1 + $0x2f0] ss:$8 sps:$4 sm:$0xff]  }
  0x20   :  { %711 = vmatprep.subr.bf16.mxu0 %v1363_v20  ;;  %v1482_v20 = vld [vmem:[%s1973_s1 + $0xe0] ss:$8 sps:$4 sm:$0xff]   ;;  %v33_v62 = vld [vmem:[%s1974_s0 + $0x30] sm:$0xff]  ;;  %v1500_v6 = vld [vmem:[%s1975_s3 + $0x78] sm:$0xff]  }
  0x21   :  { %665 = vmatpush1.bf16.msra.mxu1 %v1434_v43  ;;  %v1487_v31 = vld [vmem:[%s1975_s3] sm:$0xff]   ;;  %v1493_v43 = vld [vmem:[%s1975_s3 + $0x18] sm:$0xff]   ;;  %v1499_v5 = vld [vmem:[%s1975_s3 + $0x30] sm:$0xff]  }
  0x22   :  { %666 = vmatprep.subr.bf16.mxu1 %v1435_v44  ;;  %v1494_v44 = vld [vmem:[%s1975_s3 + $0x60] sm:$0xff]  }
  0x23   :  { %712 = vmatpush1.bf16.msra.mxu0 %v1365_v23  ;;  %v1421_v23 = vld [vmem:[%s1973_s1 + $0x264] ss:$8 sps:$4 sm:$0xff]  }
  0x24   :  { %713 = vmatprep.subr.bf16.mxu0 %v1366_v26  ;;  %v34_v26 = vld [vmem:[%s1974_s0 + $0x38] sm:$0xff] }
  0x25   :  { %667 = vmatpush1.bf16.msra.mxu1 %v1440_v47  ;;  %v1449_v47 = vld [vmem:[%s1973_s1 + $0x2b0] ss:$8 sps:$4 sm:$0xff]  }
  0x26   :  { %668 = vmatprep.subr.bf16.mxu1 %v1441_v48  ;;  %v1457_v48 = vld [vmem:[%s1973_s1 + $0x2c4] ss:$8 sps:$4 sm:$0xff]  }
  0x27   :  { %714 = vmatpush1.bf16.msra.mxu0 %v1368_v29  ;;  %v1427_v29 = vld [vmem:[%s1973_s1 + $0x274] ss:$8 sps:$4 sm:$0xff]  }
  0x28   :  { %715 = vmatprep.subr.bf16.mxu0 %v1369_v30  ;;  %v41_v30 = vpack.c.bf16 %v34_v26, %v27_v25 }
  0x29   :  { %669 = vmatpush1.bf16.msra.mxu1 %v1446_v51  ;;  %v1461_v51 = vld [vmem:[%s1973_s1 + $0x2d0] ss:$8 sps:$4 sm:$0xff]  }
  0x2a   :  { %670 = vmatprep.subr.bf16.mxu1 %v1447_v52  ;;  %v1469_v52 = vld [vmem:[%s1973_s1 + $0x2e4] ss:$8 sps:$4 sm:$0xff]  }
  0x2b   :  { %716 = vmatpush1.bf16.msra.mxu0 %v1371_v33  ;;  %v1425_v33 = vld [vmem:[%s1973_s1 + $0x270] ss:$8 sps:$4 sm:$0xff]  }
  0x2c   :  { %717 = vmatprep.subr.bf16.mxu0 %v1372_v34  ;;  %v1433_v34 = vld [vmem:[%s1973_s1 + $0x284] ss:$8 sps:$4 sm:$0xff]  }
  0x2d   :  { %671 = vmatpush1.bf16.msra.mxu1 %v1452_v57  ;;  %v38_v57 = vld [vmem:[%s1974_s0 + $0x58] sm:$0xff] }
  0x2e   :  { %672 = vmatprep.subr.bf16.mxu1 %v1453_v60  ;;  %v1479_v60 = vld [vmem:[%s1973_s1 + $0x300] ss:$8 sps:$4 sm:$0xff]  }
  0x2f   :  { %718 = vmatpush1.bf16.msra.mxu0 %v1374_v37  ;;  %v1431_v37 = vld [vmem:[%s1973_s1 + $0x280] ss:$8 sps:$4 sm:$0xff]  }
  0x30   :  { %719 = vmatprep.subr.bf16.mxu0 %v1375_v38  ;;  %v1439_v38 = vld [vmem:[%s1973_s1 + $0x294] ss:$8 sps:$4 sm:$0xff]  }
  0x31   :  { %673 = vmatpush1.bf16.msra.mxu1 %v1458_v1  ;;  %v1495_v1 = vld [vmem:[%s1975_s3 + $0x20] sm:$0xff]  }
  0x32   :  { %674 = vmatprep.subr.bf16.mxu1 %v1459_v2  ;;  %v1496_v2 = vld [vmem:[%s1975_s3 + $0x68] sm:$0xff]  }
  0x33   :  { %720 = vmatpush1.bf16.msra.mxu0 %v1377_v41  ;;  %v1437_v41 = vld [vmem:[%s1973_s1 + $0x290] ss:$8 sps:$4 sm:$0xff]  }
  0x34   :  { %721 = vmatprep.subr.bf16.mxu0 %v1378_v42  ;;  %v1445_v42 = vld [vmem:[%s1973_s1 + $0x2a4] ss:$8 sps:$4 sm:$0xff]  }
  0x35   :  { %675 = vmatpush1.bf16.msra.mxu1 %v1464_v7  ;;  %v1501_v7 = vld [vmem:[%s1975_s3 + $0x38] sm:$0xff]  }
  0x36   :  { %676 = vmatprep.subr.bf16.mxu1 %v1465_v9 }
  0x37   :  { %722 = vmatpush1.bf16.msra.mxu0 %v1380_v45  ;;  %v1443_v45 = vld [vmem:[%s1973_s1 + $0x2a0] ss:$8 sps:$4 sm:$0xff]  }
  0x38   :  { %723 = vmatprep.subr.bf16.mxu0 %v1381_v46  ;;  %v1451_v46 = vld [vmem:[%s1973_s1 + $0x2b4] ss:$8 sps:$4 sm:$0xff]  }
  0x39   :  { %677 = vmatpush1.bf16.msra.mxu1 %v1470_v12 }
  0x3a   :  { %678 = vmatprep.subr.bf16.mxu1 %v1471_v13  ;;  %v148_v13 = vlaneseq }
  0x3b   :  { %724 = vmatpush1.bf16.msra.mxu0 %v1383_v49  ;;  %v1455_v49 = vld [vmem:[%s1973_s1 + $0x2c0] ss:$8 sps:$4 sm:$0xff]  }
  0x3c   :  { %725 = vmatprep.subr.bf16.mxu0 %v1384_v50  ;;  %v1463_v50 = vld [vmem:[%s1973_s1 + $0x2d4] ss:$8 sps:$4 sm:$0xff]  }
  0x3d   :  { %679 = vmatpush1.bf16.msra.mxu1 %v1476_v17 }
  0x3e   :  { %680 = vmatprep.subr.bf16.mxu1 %v1477_v19 }
  0x3f   :  { %726 = vmatpush1.bf16.msra.mxu0 %v1386_v53  ;;  %v1467_v53 = vld [vmem:[%s1973_s1 + $0x2e0] ss:$8 sps:$4 sm:$0xff]  }
  0x40   :  { %738 = vmatprep.subr.bf16.mxu0 %v1389_v56  ;;  %v31_v56 = vld [vmem:[%s1974_s0 + $0x20] sm:$0xff] }
  0x41   :  { %681 = vmatpush1.bf16.msra.mxu1 %v1482_v20 }
  0x42   :  { %728 = vmatmul.mubr.bf16.vlgmr.msra.gmra.mrb[0].mxu0 %v43_v59  ;;  %682 = vmatprep.subr.bf16.mxu1 %v1483_v21  ;;  %v45_v59 = vpack.c.bf16 %v38_v57, %v31_v56 }
  0x43   :  { %739 = vmatpush1.bf16.msra.mxu0 %v1387_v58  ;;  %770 = vmatprep.mubr.bf16.mxu0 %v46_v0  ;;  %v1481_v58 = vld [vmem:[%s1973_s1 + $0x304] ss:$8 sps:$4 sm:$0xff]  }
  0x44   :  { %740 = vmatprep.subr.bf16.mxu0 %v1392_v63  ;;  %v40_v63 = vld [vmem:[%s1974_s0 + $0x68] sm:$0xff] }
  0x45   :  { %683 = vmatpush1.bf16.msra.mxu1 %v1485_v24  ;;  %v47_v0 = vpack.c.bf16 %v40_v63, %v33_v62 }
  0x46   :  { %1269 = vmatprep.subr.bf16.mxu1 %v1486_v27 }
  0x47   :  { %741 = vmatpush1.bf16.msra.mxu0 %v1390_v3  ;;  %v1497_v3 = vld [vmem:[%s1975_s3 + $0x28] sm:$0xff]  }
  0x48   :  { %742 = vmatprep.subr.bf16.mxu0 %v1397_v4  ;;  %685 = vmatmul.mubr.bf16.vlgmr.msra.gmra.mrb[0].mxu1 %v41_v30  ;;  %v1498_v4 = vld [vmem:[%s1975_s3 + $0x70] sm:$0xff]  }
  0x49   :  { %1270 = vmatpush3.bf16.msra.mxu1 %v1487_v31 }
  0x4a   :  { %1271 = vmatprep.subr.bf16.mxu1 %v1488_v32 }
  0x4b   :  { %743 = vmatpush1.bf16.msra.mxu0 %v1395_v10 }
  0x4c   :  { %744 = vmatprep.subr.bf16.mxu0 %v1403_v11 }
  0x4d   :  { %1272 = vmatpush3.bf16.msra.mxu1 %v1489_v35 }
  0x4e   :  { %1273 = vmatprep.subr.bf16.mxu1 %v1490_v36 }
  0x4f   :  { %745 = vmatpush1.bf16.msra.mxu0 %v1401_v14  ;;  %v149_v14 = vshrl.u32 %v148_v13, 7 }
  0x50   :  { %746 = vmatprep.subr.bf16.mxu0 %v1409_v15 }
  0x51   :  { %1274 = vmatpush3.bf16.msra.mxu1 %v1491_v39  ;;  %v150_v15 = vsub.s32 0, %v149_v14  ;;  %v154_v17 = vsub.s32 1, %v149_v14  ;;  %v1503_v39 = vld [vmem:[%s1976_s5 + $0x8] sm:$0xff]  }
  0x52   :  { %1275 = vmatprep.subr.bf16.mxu1 %v1492_v40  ;;  %v1504_v40 = vld [vmem:[%s1976_s5 + $0x10] sm:$0xff]  }
  0x53   :  { %747 = vmatpush1.bf16.msra.mxu0 %v1407_v16  ;;  %v146_v16 = vld [vmem:[%s1977_s2] sm:$0x3] }
  0x54   :  { %748 = vmatprep.subr.bf16.mxu0 %v1415_v18  ;;  %v151_v18 = vrot.slane %v146_v16, %v150_v15  ;;  %v155_v19 = vrot.slane %v146_v16, %v154_v17 }
  0x55   :  { %1276 = vmatpush3.bf16.msra.mxu1 %v1493_v43  ;;  %v1507_v43 = vld [vmem:[%s1976_s5 + $0x28] sm:$0xff]  }
  0x56   :  { %1277 = vmatprep.subr.bf16.mxu1 %v1494_v44  ;;  %v1508_v44 = vld [vmem:[%s1976_s5 + $0x30] sm:$0xff]  }
  0x57   :  { %749 = vmatpush1.bf16.msra.mxu0 %v1413_v22 }
  0x58   :  { %750 = vmatprep.subr.bf16.mxu0 %v1421_v23 }
  0x59   :  { %1278 = vmatpush3.bf16.msra.mxu1 %v1495_v1 }
  0x5a   :  { %1279 = vmatprep.subr.bf16.mxu1 %v1496_v2 }
  0x5b   :  { %751 = vmatpush1.bf16.msra.mxu0 %v1419_v28 }
  0x5c   :  { %752 = vmatprep.subr.bf16.mxu0 %v1427_v29 }
  0x5d   :  { %1280 = vmatpush3.bf16.msra.mxu1 %v1497_v3 }
  0x5e   :  { %1281 = vmatprep.subr.bf16.mxu1 %v1498_v4 }
  0x5f   :  { %753 = vmatpush1.bf16.msra.mxu0 %v1425_v33 }
  0x60   :  { %754 = vmatprep.subr.bf16.mxu0 %v1433_v34 }
  0x61   :  { %1282 = vmatpush3.bf16.msra.mxu1 %v1499_v5 }
  0x62   :  { %1283 = vmatprep.subr.bf16.mxu1 %v1500_v6 }
  0x63   :  { %755 = vmatpush1.bf16.msra.mxu0 %v1431_v37 }
  0x64   :  { %756 = vmatprep.subr.bf16.mxu0 %v1439_v38  ;;  %v1502_v38 = vld [vmem:[%s1976_s5] sm:$0xff]  }
  0x65   :  { %1284 = vmatpush3.bf16.msra.mxu1 %v1501_v7 }
  0x66   :  { %1300 = vmatprep.subr.bf16.mxu1 %v1511_v8 }
  0x67   :  { %757 = vmatpush1.bf16.msra.mxu0 %v1437_v41  ;;  %v1505_v41 = vld [vmem:[%s1976_s5 + $0x18] sm:$0xff]  }
  0x68   :  { %758 = vmatprep.subr.bf16.mxu0 %v1445_v42  ;;  %v1506_v42 = vld [vmem:[%s1976_s5 + $0x20] sm:$0xff]  }
  0x6b   :  { %759 = vmatpush1.bf16.msra.mxu0 %v1443_v45  ;;  %v1509_v45 = vld [vmem:[%s1976_s5 + $0x38] sm:$0xff]  }
  0x6c   :  { %760 = vmatprep.subr.bf16.mxu0 %v1451_v46 }
  0x6f   :  { %761 = vmatpush1.bf16.msra.mxu0 %v1449_v47  ;;  %v1234_v47 = vld [vmem:[%s1978_s4] ss:$0 sm:$0xff] }
  0x70   :  { %762 = vmatprep.subr.bf16.mxu0 %v1457_v48 }
  0x73   :  { %763 = vmatpush1.bf16.msra.mxu0 %v1455_v49 }
  0x74   :  { %764 = vmatprep.subr.bf16.mxu0 %v1463_v50 }
  0x77   :  { %765 = vmatpush1.bf16.msra.mxu0 %v1461_v51 }
  0x78   :  { %766 = vmatprep.subr.bf16.mxu0 %v1469_v52 }
  0x7b   :  { %767 = vmatpush1.bf16.msra.mxu0 %v1467_v53 }
  0x7c   :  { %768 = vmatprep.subr.bf16.mxu0 %v1475_v54 }
  0x7f   :  { %769 = vmatpush1.bf16.msra.mxu0 %v1473_v55 }
  0x80   :  { %781 = vmatprep.subr.bf16.mxu0 %v1481_v58  ;;  %v1251_v58 = vld [vmem:[%s1979_s6] ss:$0 sm:$0xff] }
  0x82   :  { %771 = vmatmul.mubr.bf16.vlgmr.msra.gmra.mrb[0].mxu0 %v45_v59 }
  0x83   :  { %782 = vmatpush1.bf16.msra.mxu0 %v1479_v60  ;;  %813 = vmatprep.mubr.bf16.mxu0 %v1510_v61 }
  0x8e   :  { %1233 = vmatmul.mubr.msk.bf16.vlgmr.msra.gmra.mrb[0].mxu0 %vm648_vm0, %v47_v0 }
 0x11b   :  { %v686_v9 = vpop.f32.mrb[0].mxu1 }
 0x11c   :  { %v688_v10 = vpop.f32.mrb[1].mxu1  ;;  %v687_v20 = vadd.f32 %v686_v9, %v151_v18 }
 0x11d   :  { %v690_v11 = vpop.f32.mrb[2].mxu1  ;;  %v689_v21 = vadd.f32 %v688_v10, %v155_v19 }
 0x11e   :  { %v692_v12 = vpop.f32.mrb[3].mxu1  ;;  %v691_v23 = vadd.f32 %v690_v11, %v151_v18 }
 0x11f   :  { %v693_v26 = vadd.f32 %v692_v12, %v155_v19 }
 0x161   :  { %v815_v22 = vpop.f32.mrb[0].mxu0 }
 0x162   :  { %v1321_v24 = vadd.f32 %v815_v22, %v687_v20  ;;  %v817_v25 = vpop.f32.mrb[1].mxu0 }
 0x163   :  { %v1323_v27 = vadd.f32 %v817_v25, %v689_v21  ;;  %v819_v28 = vpop.f32.mrb[2].mxu0 }
 0x164   :  { %v1325_v29 = vadd.f32 %v819_v28, %v691_v23  ;;  %v821_v30 = vpop.f32.mrb[3].mxu0  ;;  %v824_v32 = vmax.f32 %v1321_v24, 0.0 }
 0x165   :  { %v1327_v31 = vadd.f32 %v821_v30, %v693_v26  ;;  %v825_v34 = vmax.f32 %v1323_v27, 0.0 }
 0x166   :  { %v826_v33 = vmax.f32 %v1325_v29, 0.0 }
 0x167   :  { %v827_v35 = vmax.f32 %v1327_v31, 0.0 }
 0x168   :  { %v828_v36 = vpack.c.bf16 %v826_v33, %v824_v32 }
 0x169   :  { %v829_v37 = vpack.c.bf16 %v827_v35, %v825_v34 }
 0x16b   :  { %997 = vmatprep.mubr.bf16.mxu1 %v829_v37 }
 0x16c   :  { %998 = vmatmul.mubr.bf16.vlgmr.msra.gmra.mrb[4].mxu1 %v828_v36 }
 0x16d   :  { %1301 = vmatpush3.bf16.msra.mxu1 %v1502_v38  ;;  %1316 = vmatprep.mubr.msk.bf16.mxu1 %vm1512_vm1, %v1511_v8 }
 0x16e   :  { %1302 = vmatprep.subr.bf16.mxu1 %v1511_v8 }
 0x171   :  { %1303 = vmatpush3.bf16.msra.mxu1 %v1503_v39 }
 0x172   :  { %1304 = vmatprep.subr.bf16.mxu1 %v1511_v8 }
 0x175   :  { %1305 = vmatpush3.bf16.msra.mxu1 %v1504_v40 }
 0x176   :  { %1306 = vmatprep.subr.bf16.mxu1 %v1511_v8 }
 0x179   :  { %1307 = vmatpush3.bf16.msra.mxu1 %v1505_v41 }
 0x17a   :  { %1308 = vmatprep.subr.bf16.mxu1 %v1511_v8 }
 0x17d   :  { %1309 = vmatpush3.bf16.msra.mxu1 %v1506_v42 }
 0x17e   :  { %1310 = vmatprep.subr.bf16.mxu1 %v1511_v8 }
 0x181   :  { %1311 = vmatpush3.bf16.msra.mxu1 %v1507_v43 }
 0x182   :  { %1312 = vmatprep.subr.bf16.mxu1 %v1511_v8 }
 0x185   :  { %1313 = vmatpush3.bf16.msra.mxu1 %v1508_v44 }
 0x186   :  { %1314 = vmatprep.subr.bf16.mxu1 %v1511_v8 }
 0x189   :  { %1315 = vmatpush3.bf16.msra.mxu1 %v1509_v45 }
 0x23f   :  { %v1285_v46 = vpop.f32.mrb[4].mxu1 }
 0x240   :  { %v1286_v48 = vpop.f32.mrb[5].mxu1 }
 0x241   :  { %v1287_v49 = vadd.f32 %v1286_v48, %v1285_v46  ;;  %v1288_v50 = vpop.f32.mrb[6].mxu1 }
 0x242   :  { %v1289_v51 = vpop.f32.mrb[7].mxu1 }
 0x243   :  { %v1000_v52 = vadd.f32 %v1287_v49, %v1234_v47  ;;  %v1290_v53 = vadd.f32 %v1289_v51, %v1288_v50 }
 0x245   :  { %v1003_v54 = vadd.f32 %v1290_v53, %v1234_v47  ;;  %v1006_v55 = vmax.f32 %v1000_v52, 0.0 }
 0x247   :  { %v1007_v56 = vmax.f32 %v1003_v54, 0.0 }
 0x249   :  { %v1008_v57 = vpack.c.bf16 %v1007_v56, %v1006_v55 }
 0x24b   :  { %1317 = vmatmul.mubr.bf16.vlgmr.msra.gmra.mrb[8].mxu1 %v1008_v57 }
 0x31e   :  { %v1114_v59 = vpop.f32.mrb[8].mxu1 }
 0x31f   :  { %v1318_v60 = vpop.f32.mrb[9].mxu1  ;;  %v1115_v62 = vadd.f32 %v1251_v58, %v1114_v59 }
 0x320   :  { %v1117_v61 = vpop.f32.mrb[10].mxu1 }
 0x321   :  { %v1118_v63 = vadd.f32 %v1251_v58, %v1117_v61  ;;  %v1319_v0 = vpop.f32.mrb[11].mxu1 }
 0x323   :  { %v1267_v1 = vpack.c.bf16 %v1118_v63, %v1115_v62 }
 0x325   :  { %1268 = vst [vmem:[%s1980_s7] sm:$0xff] %v1267_v1  }

</bundles_post_ra>
